<compile_context>
chip_gen: v7x
topology: tpu7x:2x2x1
jax: 0.10.0
libtpu: 0.0.40
codegen_flags: <defaults>
</compile_context>

<pallas_src>
import jax
import jax.numpy as jnp
import numpy as np
from jax.experimental import pallas as pl
from jax.experimental.pallas import tpu as pltpu

COMMITMENT_COST = 0.25


def _make_kernel(d, k, c_out, hw_valid, tile_hw, needs_mask):
    """Fused encoder + VQ + decoder kernel (static sizes baked in)."""

    def kernel(x_ref, w1_ref, b1_ref, w2_ref, dec_ref, sumsq_ref, counts_ref):
        x = x_ref[0, :, :].astype(jnp.float32)                   # (C, TN)

        # --- fused encoder + distance matmul (single MXU pass) --------------
        #   rows 0:d   -> z      (encoder output, bias folded via b1)
        #   rows d:d+k -> dists  = |e|^2 - 2 e.z  (scale/|e|^2/bias folded)
        y = jnp.dot(w1_ref[...], x,
                    preferred_element_type=jnp.float32) + b1_ref[...]  # (D+K, TN)
        z = y[:d, :]                                              # (D, TN)
        dists = y[d:, :]                                          # (K, TN)

        # --- first-occurrence argmin over the codebook axis ------------------
        min_d = jnp.min(dists, axis=0, keepdims=True)             # (1, TN)
        iota_col = jax.lax.broadcasted_iota(jnp.int32, (k, 1), 0)  # (K, 1)
        first_idx = jnp.min(jnp.where(dists <= min_d, iota_col, k),
                            axis=0, keepdims=True)                # (1, TN)
        if needs_mask:
            col = jax.lax.broadcasted_iota(jnp.int32, (1, tile_hw), 1)
            col = col + pl.program_id(1) * tile_hw
            valid = col < hw_valid                                # (1, TN)
            # padded columns select no code -> zero one_hot / counts / dec
            first_idx = jnp.where(valid, first_idx, k)
        one_hot = (iota_col == first_idx).astype(jnp.float32)     # (K, TN)

        # --- fused codebook lookup + decoder (single MXU pass) ---------------
        #   rows 0:d        -> quant (exact codebook row select)
        #   rows d:d+c_out  -> dec   = dec_w^T quant + dec_b (bias folded)
        qd = jnp.dot(w2_ref[...], one_hot,
                     preferred_element_type=jnp.float32)          # (D+Cout, TN)
        quant = qd[:d, :]
        dec_ref[0, :, :] = qd[d:, :].astype(dec_ref.dtype)

        # --- per-tile partial reductions (finished in fp32 in the wrapper) ---
        diff = quant - z
        sq = jnp.sum(diff * diff, axis=0, keepdims=True)          # (1, TN)
        if needs_mask:
            sq = jnp.where(valid, sq, 0.0)
        sumsq_ref[0, 0, :, :] = jnp.sum(sq, axis=1, keepdims=True)        # (1, 1)
        counts_ref[0, 0, :, :] = jnp.sum(one_hot, axis=1, keepdims=True)  # (K, 1)

    return kernel


def _round_up(v, m):
    return ((v + m - 1) // m) * m


def _choose_tile(hw, max_tile):
    """Lane-dense spatial tile: always a multiple of 128, always bounded by
    max_tile.  If hw has no suitable divisor we pad hw up (tail masked)."""
    max_tile = max(128, (max_tile // 128) * 128)
    hw128 = _round_up(hw, 128)
    if hw128 <= max_tile:
        return hw128                      # one (possibly padded) tile
    for t in range(max_tile, 127, -128):  # largest 128-multiple dividing hw
        if hw % t == 0:
            return t
    return max_tile                       # no divisor: pad hw up to max_tile


def fixed_vqvae_forward(x_nchw, params, max_tile_hw=8192):
    """Run FixedVQVAE.forward: returns (decoded NCHW, vq_loss, perplexity)."""
    enc_w, enc_b, codebook, dec_w, dec_b = params
    B, C, H, W = x_nchw.shape
    D = enc_w.shape[1]
    K = codebook.shape[0]
    Cout = dec_w.shape[1]

    HW = H * W
    tile_hw = _choose_tile(HW, max_tile_hw)
    HW_pad = _round_up(HW, tile_hw)
    n_t = HW_pad // tile_hw
    needs_mask = HW_pad != HW
    N = B * HW

    # Free reshape only — no NCHW<->NHWC transpose passes around the kernel.
    x_flat = x_nchw.reshape(B, C, HW)
    if needs_mask:
        x_flat = jnp.pad(x_flat, ((0, 0), (0, 0), (0, HW_pad - HW)))

    # ---- fold everything foldable into two resident matmul operands --------
    ew_t = enc_w.T.astype(jnp.float32)                       # (D, C)
    eb_col = enc_b.reshape(D, 1).astype(jnp.float32)         # (D, 1)
    cb = codebook.astype(jnp.float32)                        # (K, D)
    cb_sq = jnp.sum(cb * cb, axis=1, keepdims=True)          # (K, 1)
    # encoder rows + (scaled, biased) distance rows in one LHS / bias
    W1 = jnp.concatenate([ew_t, -2.0 * jnp.dot(cb, ew_t)], axis=0)          # (D+K, C)
    b1 = jnp.concatenate([eb_col, cb_sq - 2.0 * jnp.dot(cb, eb_col)], axis=0)  # (D+K, 1)
    # codebook-lookup rows + decoder rows (dec bias folded via one-hot columns)
    dec_cb = jnp.dot(dec_w.T.astype(jnp.float32), cb.T) + dec_b.reshape(Cout, 1)  # (Cout, K)
    W2 = jnp.concatenate([cb.T, dec_cb], axis=0)                            # (D+Cout, K)

    kernel = _make_kernel(D, K, Cout, HW, tile_hw, needs_mask)

    dec_flat, sumsq_part, counts_part = pl.pallas_call(
        kernel,
        out_shape=(
            jax.ShapeDtypeStruct((B, Cout, HW_pad), jnp.float32),
            jax.ShapeDtypeStruct((B, n_t, 1, 1), jnp.float32),
            jax.ShapeDtypeStruct((B, n_t, K, 1), jnp.float32),
        ),
        grid_spec=pltpu.PrefetchScalarGridSpec(
            num_scalar_prefetch=0,
            grid=(B, n_t),
            in_specs=[
                pl.BlockSpec((1, C, tile_hw), lambda b, t: (b, 0, t)),   # x tile
                pl.BlockSpec((D + K, C), lambda b, t: (0, 0)),           # W1
                pl.BlockSpec((D + K, 1), lambda b, t: (0, 0)),           # b1
                pl.BlockSpec((D + Cout, K), lambda b, t: (0, 0)),        # W2
            ],
            out_specs=[
                pl.BlockSpec((1, Cout, tile_hw), lambda b, t: (b, 0, t)),
                pl.BlockSpec((1, 1, 1, 1), lambda b, t: (b, t, 0, 0)),
                pl.BlockSpec((1, 1, K, 1), lambda b, t: (b, t, 0, 0)),
            ],
        ),
        compiler_params=pltpu.CompilerParams(
            dimension_semantics=("parallel", "parallel"),   # feeds both TCs on v7x
            vmem_limit_bytes=48 * 1024 * 1024),              # v7x-safe (64 MiB/TC)
    )(x_flat, W1, b1, W2)

    decoded = dec_flat[:, :, :HW].reshape(B, Cout, H, W)     # free when unpadded

    # Finalize loss / perplexity from the per-tile partial sums (fp32).
    sumsq = jnp.sum(sumsq_part)
    mse = sumsq / jnp.float32(N * D)
    vq_loss = (1.0 + COMMITMENT_COST) * mse
    counts = jnp.sum(counts_part, axis=(0, 1, 3))            # (K,)
    avg_probs = counts / jnp.float32(N)
    perplexity = jnp.exp(-jnp.sum(avg_probs * jnp.log(avg_probs + 1e-10)))
    return decoded, vq_loss, perplexity


def reference_forward(x_nchw, params):
    """Pure-JAX reference mirroring the PyTorch forward semantics."""
    enc_w, enc_b, codebook, dec_w, dec_b = params
    B, C, H, W = x_nchw.shape
    z = jnp.einsum('bchw,cd->bhwd', x_nchw.astype(jnp.float32), enc_w) + enc_b[0]
    flat = z.reshape(-1, z.shape[-1])
    dists = (jnp.sum(flat ** 2, axis=1, keepdims=True)
             + jnp.sum(codebook ** 2, axis=1)
             - 2.0 * flat @ codebook.T)
    idx = jnp.argmin(dists, axis=1)
    quant = codebook[idx]
    mse = jnp.mean((quant - flat) ** 2)
    loss = (1.0 + COMMITMENT_COST) * mse
    one_hot = jax.nn.one_hot(idx, codebook.shape[0], dtype=jnp.float32)
    p = one_hot.mean(axis=0)
    perp = jnp.exp(-jnp.sum(p * jnp.log(p + 1e-10)))
    dec = quant @ dec_w + dec_b[0]
    decoded = dec.reshape(B, H, W, -1).transpose(0, 3, 1, 2)
    return decoded, loss, perp


def init_params(key, c_in=3, embedding_dim=32, codebook_size=64, c_out=3):
    k1, k2, k3, k4, k5 = jax.random.split(key, 5)
    enc_w = jax.random.normal(k1, (c_in, embedding_dim), jnp.float32) * 0.1
    enc_b = jax.random.normal(k2, (1, embedding_dim), jnp.float32) * 0.01
    # Codebook initialized uniform(-1/K, 1/K) as in VectorQuantizerEMA.__init__.
    codebook = jax.random.uniform(
        k3, (codebook_size, embedding_dim), jnp.float32,
        minval=-1.0 / codebook_size, maxval=1.0 / codebook_size)
    dec_w = jax.random.normal(k4, (embedding_dim, c_out), jnp.float32) * 0.1
    dec_b = jax.random.normal(k5, (1, c_out), jnp.float32) * 0.01
    return enc_w, enc_b, codebook, dec_w, dec_b


def _check(x, params, max_tile_hw):
    decoded, vq_loss, perplexity = fixed_vqvae_forward(x, params, max_tile_hw)
    jax.block_until_ready((decoded, vq_loss, perplexity))
    ref_dec, ref_loss, ref_perp = reference_forward(x, params)
    np.testing.assert_allclose(np.asarray(decoded), np.asarray(ref_dec),
                               rtol=1e-5, atol=1e-5)
    np.testing.assert_allclose(float(vq_loss), float(ref_loss), rtol=1e-5, atol=1e-6)
    np.testing.assert_allclose(float(perplexity), float(ref_perp), rtol=1e-5, atol=1e-5)


if __name__ == "__main__":
    # TODO(synk): the original module accepts arbitrary encoder/decoder nn.Modules;
    # here they are instantiated as deterministic 1x1-conv (per-pixel linear) maps.
    key = jax.random.PRNGKey(0)
    kx, kx2, kp = jax.random.split(key, 3)

    B, C, H, W = 2, 3, 16, 16          # small NCHW image batch
    embedding_dim, codebook_size = 32, 64

    params = init_params(kp, c_in=C, embedding_dim=embedding_dim,
                         codebook_size=codebook_size, c_out=C)

    # main case: 16x16 (HW=256, single lane-dense tile)
    x = jax.random.normal(kx, (B, C, H, W), jnp.float32)
    _check(x, params, max_tile_hw=8192)
    # multi-tile case: same image, forced 128-column tiles (grid (2, 2))
    _check(x, params, max_tile_hw=128)
    # padded-tail case: 12x12 (HW=144 -> padded to 256, tail masked)
    x2 = jax.random.normal(kx2, (B, C, 12, 12), jnp.float32)
    _check(x2, params, max_tile_hw=128)

    print("KERNEL_OK")
</pallas_src>

<mosaic_0001>
module attributes {stable_mosaic.version = 11 : i64} {
  func.func @kernel(%arg0: i32, %arg1: i32, %arg2: memref<1x3x256xf32, #tpu.memory_space<vmem>>, %arg3: memref<96x3xf32, #tpu.memory_space<vmem>>, %arg4: memref<96x1xf32, #tpu.memory_space<vmem>>, %arg5: memref<35x64xf32, #tpu.memory_space<vmem>>, %arg6: memref<1x3x256xf32, #tpu.memory_space<vmem>>, %arg7: memref<1x1x1x1xf32, #tpu.memory_space<vmem>>, %arg8: memref<1x1x64x1xf32, #tpu.memory_space<vmem>>) attributes {dimension_semantics = [#tpu.dimension_semantics<parallel>, #tpu.dimension_semantics<parallel>], iteration_bounds = array<i64: 2, 1>, scalar_prefetch = 0 : i64, scratch_operands = 0 : i64, tpu.core_type = #tpu.core_type<tc>, window_params = [{transform_indices = @transform_0, window_bounds = array<i64: 1, 3, 256>}, {pipeline_mode = #tpu.pipeline_mode<synchronous>, transform_indices = @transform_1, window_bounds = array<i64: 96, 3>}, {pipeline_mode = #tpu.pipeline_mode<synchronous>, transform_indices = @transform_2, window_bounds = array<i64: 96, 1>}, {pipeline_mode = #tpu.pipeline_mode<synchronous>, transform_indices = @transform_3, window_bounds = array<i64: 35, 64>}, {transform_indices = @transform_4, window_bounds = array<i64: 1, 3, 256>}, {transform_indices = @transform_5, window_bounds = array<i64: 1, 1, 1, 1>}, {transform_indices = @transform_6, window_bounds = array<i64: 1, 1, 64, 1>}]} {
    %c0 = arith.constant 0 : index
    %c0_0 = arith.constant 0 : index
    %c0_1 = arith.constant 0 : index
    %0 = vector.load %arg2[%c0, %c0_0, %c0_1] : memref<1x3x256xf32, #tpu.memory_space<vmem>>, vector<1x3x256xf32>
    %1 = vector.shape_cast %0 : vector<1x3x256xf32> to vector<3x256xf32>
    %c0_2 = arith.constant 0 : index
    %c0_3 = arith.constant 0 : index
    %2 = vector.load %arg3[%c0_2, %c0_3] : memref<96x3xf32, #tpu.memory_space<vmem>>, vector<96x3xf32>
    %cst = arith.constant dense<0.000000e+00> : vector<96x256xf32>
    %3 = tpu.matmul %2, %1, %cst {dimension_numbers = #tpu.dot_dimension_numbers<[1], [0], [0], [1], [0, 0, 1, 1], [], []>} : vector<96x3xf32>, vector<3x256xf32>, vector<96x256xf32> -> vector<96x256xf32>
    %c0_4 = arith.constant 0 : index
    %c0_5 = arith.constant 0 : index
    %4 = vector.load %arg4[%c0_4, %c0_5] : memref<96x1xf32, #tpu.memory_space<vmem>>, vector<96x1xf32>
    %5 = vector.broadcast %4 : vector<96x1xf32> to vector<96x256xf32>
    %6 = arith.addf %3, %5 : vector<96x256xf32>
    %7 = vector.extract_strided_slice %6 {offsets = [0, 0], sizes = [32, 256], strides = [1, 1]} : vector<96x256xf32> to vector<32x256xf32>
    %8 = vector.extract_strided_slice %6 {offsets = [32, 0], sizes = [64, 256], strides = [1, 1]} : vector<96x256xf32> to vector<64x256xf32>
    %cst_6 = arith.constant dense<0x7F800000> : vector<256xf32>
    %9 = vector.multi_reduction <minimumf>, %8, %cst_6 [0] : vector<64x256xf32> to vector<256xf32>
    %10 = vector.shape_cast %9 : vector<256xf32> to vector<1x256xf32>
    %11 = tpu.iota {dimensions = array<i32: 0>} : vector<64x1xi32>
    %12 = vector.broadcast %10 : vector<1x256xf32> to vector<64x256xf32>
    %13 = arith.cmpf ole, %8, %12 : vector<64x256xf32>
    %c64_i32 = arith.constant 64 : i32
    %14 = vector.shape_cast %11 : vector<64x1xi32> to vector<64x1xi32>
    %15 = vector.broadcast %14 : vector<64x1xi32> to vector<64x256xi32>
    %16 = vector.broadcast %c64_i32 : i32 to vector<64x256xi32>
    %17 = arith.select %13, %15, %16 : vector<64x256xi1>, vector<64x256xi32>
    %cst_7 = arith.constant dense<2147483647> : vector<256xi32>
    %18 = vector.multi_reduction <minsi>, %17, %cst_7 [0] : vector<64x256xi32> to vector<256xi32>
    %19 = vector.shape_cast %18 : vector<256xi32> to vector<1x256xi32>
    %20 = vector.broadcast %11 : vector<64x1xi32> to vector<64x256xi32>
    %21 = vector.broadcast %19 : vector<1x256xi32> to vector<64x256xi32>
    %22 = arith.cmpi eq, %20, %21 : vector<64x256xi32>
    %23 = arith.extui %22 : vector<64x256xi1> to vector<64x256xi32>
    %24 = arith.sitofp %23 : vector<64x256xi32> to vector<64x256xf32>
    %c0_8 = arith.constant 0 : index
    %c0_9 = arith.constant 0 : index
    %25 = vector.load %arg5[%c0_8, %c0_9] : memref<35x64xf32, #tpu.memory_space<vmem>>, vector<35x64xf32>
    %cst_10 = arith.constant dense<0.000000e+00> : vector<35x256xf32>
    %26 = tpu.matmul %25, %24, %cst_10 {dimension_numbers = #tpu.dot_dimension_numbers<[1], [0], [0], [1], [0, 0, 1, 1], [], []>} : vector<35x64xf32>, vector<64x256xf32>, vector<35x256xf32> -> vector<35x256xf32>
    %27 = vector.extract_strided_slice %26 {offsets = [0, 0], sizes = [32, 256], strides = [1, 1]} : vector<35x256xf32> to vector<32x256xf32>
    %28 = vector.extract_strided_slice %26 {offsets = [32, 0], sizes = [3, 256], strides = [1, 1]} : vector<35x256xf32> to vector<3x256xf32>
    %c0_11 = arith.constant 0 : index
    %c0_12 = arith.constant 0 : index
    %c0_13 = arith.constant 0 : index
    %29 = vector.load %arg6[%c0_11, %c0_12, %c0_13] : memref<1x3x256xf32, #tpu.memory_space<vmem>>, vector<1x3x256xf32>
    %30 = vector.shape_cast %29 : vector<1x3x256xf32> to vector<3x256xf32>
    %31 = vector.shape_cast %28 : vector<3x256xf32> to vector<1x3x256xf32>
    tpu.vector_store %arg6[%c0_11, %c0_12, %c0_13], %31 {strides = array<i32>} : memref<1x3x256xf32, #tpu.memory_space<vmem>>, vector<1x3x256xf32>,
    %32 = arith.subf %27, %7 : vector<32x256xf32>
    %33 = arith.mulf %32, %32 : vector<32x256xf32>
    %cst_14 = arith.constant dense<0.000000e+00> : vector<256xf32>
    %34 = vector.multi_reduction <add>, %33, %cst_14 [0] : vector<32x256xf32> to vector<256xf32>
    %35 = vector.shape_cast %34 : vector<256xf32> to vector<1x256xf32>
    %cst_15 = arith.constant dense<0.000000e+00> : vector<1xf32>
    %36 = vector.multi_reduction <add>, %35, %cst_15 [1] : vector<1x256xf32> to vector<1xf32>
    %37 = vector.shape_cast %36 : vector<1xf32> to vector<1x1xf32>
    %c0_16 = arith.constant 0 : index
    %c0_17 = arith.constant 0 : index
    %c0_18 = arith.constant 0 : index
    %c0_19 = arith.constant 0 : index
    %38 = vector.load %arg7[%c0_16, %c0_17, %c0_18, %c0_19] : memref<1x1x1x1xf32, #tpu.memory_space<vmem>>, vector<1x1x1x1xf32>
    %39 = vector.shape_cast %38 : vector<1x1x1x1xf32> to vector<1x1xf32>
    %40 = vector.shape_cast %37 : vector<1x1xf32> to vector<1x1x1x1xf32>
    tpu.vector_store %arg7[%c0_16, %c0_17, %c0_18, %c0_19], %40 {strides = array<i32>} : memref<1x1x1x1xf32, #tpu.memory_space<vmem>>, vector<1x1x1x1xf32>,
    %cst_20 = arith.constant dense<0.000000e+00> : vector<64xf32>
    %41 = vector.multi_reduction <add>, %24, %cst_20 [1] : vector<64x256xf32> to vector<64xf32>
    %42 = vector.shape_cast %41 : vector<64xf32> to vector<64x1xf32>
    %c0_21 = arith.constant 0 : index
    %c0_22 = arith.constant 0 : index
    %c0_23 = arith.constant 0 : index
    %c0_24 = arith.constant 0 : index
    %43 = vector.load %arg8[%c0_21, %c0_22, %c0_23, %c0_24] : memref<1x1x64x1xf32, #tpu.memory_space<vmem>>, vector<1x1x64x1xf32>
    %44 = vector.shape_cast %43 : vector<1x1x64x1xf32> to vector<64x1xf32>
    %45 = vector.shape_cast %42 : vector<64x1xf32> to vector<1x1x64x1xf32>
    tpu.vector_store %arg8[%c0_21, %c0_22, %c0_23, %c0_24], %45 {strides = array<i32>} : memref<1x1x64x1xf32, #tpu.memory_space<vmem>>, vector<1x1x64x1xf32>,
    return
  }
  func.func @transform_0(%arg0: i32, %arg1: i32) -> (i32, i32, i32) {
    %c0_i32 = arith.constant 0 : i32
    %c0_i32_0 = arith.constant 0 : i32
    return %arg0, %c0_i32, %arg1 : i32, i32, i32
  }
  func.func @transform_1(%arg0: i32, %arg1: i32) -> (i32, i32) {
    %c0_i32 = arith.constant 0 : i32
    %c0_i32_0 = arith.constant 0 : i32
    %c0_i32_1 = arith.constant 0 : i32
    return %c0_i32, %c0_i32_0 : i32, i32
  }
  func.func @transform_2(%arg0: i32, %arg1: i32) -> (i32, i32) {
    %c0_i32 = arith.constant 0 : i32
    %c0_i32_0 = arith.constant 0 : i32
    %c0_i32_1 = arith.constant 0 : i32
    return %c0_i32, %c0_i32_0 : i32, i32
  }
  func.func @transform_3(%arg0: i32, %arg1: i32) -> (i32, i32) {
    %c0_i32 = arith.constant 0 : i32
    %c0_i32_0 = arith.constant 0 : i32
    %c0_i32_1 = arith.constant 0 : i32
    return %c0_i32, %c0_i32_0 : i32, i32
  }
  func.func @transform_4(%arg0: i32, %arg1: i32) -> (i32, i32, i32) {
    %c0_i32 = arith.constant 0 : i32
    %c0_i32_0 = arith.constant 0 : i32
    return %arg0, %c0_i32, %arg1 : i32, i32, i32
  }
  func.func @transform_5(%arg0: i32, %arg1: i32) -> (i32, i32, i32, i32) {
    %c0_i32 = arith.constant 0 : i32
    %c0_i32_0 = arith.constant 0 : i32
    %c0_i32_1 = arith.constant 0 : i32
    return %arg0, %arg1, %c0_i32, %c0_i32_0 : i32, i32, i32, i32
  }
  func.func @transform_6(%arg0: i32, %arg1: i32) -> (i32, i32, i32, i32) {
    %c0_i32 = arith.constant 0 : i32
    %c0_i32_0 = arith.constant 0 : i32
    %c0_i32_1 = arith.constant 0 : i32
    return %arg0, %arg1, %c0_i32, %c0_i32_0 : i32, i32, i32, i32
  }
}

</mosaic_0001>

<bundles_post_ra>
// kernel: tpu_custom_call.1
= control target key start
LH: loop header
LB: loop body
LE: loop exit
PB: predicated region body
PF: predicated region fallthrough
CT: control target
= control target key end

     0   :  { %s1300_s21 = smov 0   ;;  %s1302_s22 = smov 0   ;;  %s1722_s0 = inlined_call_operand.vmem [shape: f32[2,3,256], index: 0, kind: input, shape index: {}]   ;;  %s1723_s1 = inlined_call_operand.vmem [shape: f32[96,3], index: 1, kind: input, shape index: {}]   ;;  %s1724_s2 = inlined_call_operand.vmem [shape: f32[96,1], index: 2, kind: input, shape index: {}]   ;;  %s1725_s3 = inlined_call_operand.vmem [shape: f32[35,64], index: 3, kind: input, shape index: {}]   ;;  %s1726_s4 = inlined_call_operand.vmem [shape: f32[2,3,256], index: 4, kind: output, shape index: {0}]   ;;  %s1727_s5 = inlined_call_operand.vmem [shape: f32[2,1,1,1], index: 5, kind: output, shape index: {1}]   ;;  %s1728_s6 = inlined_call_operand.vmem [shape: f32[2,1,64,1], index: 6, kind: output, shape index: {2}]  }
   0x1   :  { %s1304_s23 = smov 0  }
   0x2 LB: > { %s29_s24 = sadd.s32 1, %s1256_s22  ;;  %p1129_p0 = scmp.ge.s32.totalorder %s1260_s23, 1  ;;  %s1260_s23 = sphi %s1304_s23, %s17_s23   ;;  %s1256_s22 = sphi %s1302_s22, %s1730_s22   ;;  %s1252_s21 = sphi %s1300_s21, %s1729_s21  }
   0x3   : > { %p31_p1 = scmp.ge.s32.totalorder %s29_s24, 2  ;;  %p242_p2 = scmp.lt.s32.totalorder %s1260_s23, 3 }
   0x5   : > { %s1732_s24 = smov (%p31_p1, %s29_s24), 0  ;;  %p243_p3 = pnand %p1129_p0, %p242_p2 }
   0x6   : > { %p296_p4 = scmp.lt.s32.totalorder (!%p243_p3), %s1252_s21, 1  ;;  %v1262_v0 = vmov (!%p243_p3), 0.0   ;;  %v1263_v1 = vmov (!%p243_p3), 0   ;;  %v347_v2 = vld [vmem:[%s1724_s2 + $0x20] sm:$0xff] (!%p243_p3)  ;;  %v349_v3 = vld [vmem:[%s1724_s2 + $0x30] sm:$0xff] (!%p243_p3)  ;;  %vm454_vm0 = vcmask (!%p243_p3), 1042432  }
   0x7   : > { %246 = sbr.rel (%p243_p3) target bundleno = 736 (0x2e0), region = 36  ;;  %523 = vmatprep.mubr.f32.mxu0 (!%p243_p3), %v1262_v0  ;;  %842 = vmatprep.mubr.f32.mxu1 (!%p243_p3), %v1262_v0  ;;  %v348_v5 = vld [vmem:[%s1724_s2 + $0x28] sm:$0xff] (!%p243_p3)  ;;  %v350_v7 = vld [vmem:[%s1724_s2 + $0x38] sm:$0xff] (!%p243_p3)  ;;  %v331_v8 = vld [vmem:[%s1723_s1] sm:$0xff] (!%p243_p3)  ;;  %vm417_vm1 = vcmask (!%p243_p3), 23552  }
   0x8   : > { %1235 = vset.pattern.permute.xlu0 (!%p243_p3), %v1263_v1  ;;  %1236 = vset.pattern.permute.xlu1 (!%p243_p3), %v1263_v1  ;;  %v351_v9 = vld [vmem:[%s1724_s2 + $0x40] sm:$0xff] (!%p243_p3)  ;;  %v352_v10 = vld [vmem:[%s1724_s2 + $0x48] sm:$0xff] (!%p243_p3)  ;;  %v353_v12 = vld [vmem:[%s1724_s2 + $0x50] sm:$0xff] (!%p243_p3) }
   0x9   : > { %377 = vperm.xlu0 (!%p243_p3), %1235, %v347_v2   ;;  %387 = vperm.xlu1 (!%p243_p3), %1236, %v349_v3   ;;  %v332_v11 = vld [vmem:[%s1723_s1 + $0x8] sm:$0xff] (!%p243_p3)  ;;  %v354_v13 = vld [vmem:[%s1724_s2 + $0x58] sm:$0xff] (!%p243_p3)  ;;  %v333_v14 = vld [vmem:[%s1723_s1 + $0x10] sm:$0xff] (!%p243_p3) }
   0xa   : > { %v343_v15 = vld [vmem:[%s1724_s2] sm:$0xff] (!%p243_p3)  ;;  %v344_v16 = vld [vmem:[%s1724_s2 + $0x8] sm:$0xff] (!%p243_p3)  ;;  %v334_v17 = vld [vmem:[%s1723_s1 + $0x18] sm:$0xff] (!%p243_p3) }
   0xb   : > { %v345_v18 = vld [vmem:[%s1724_s2 + $0x10] sm:$0xff] (!%p243_p3)  ;;  %v346_v19 = vld [vmem:[%s1724_s2 + $0x18] sm:$0xff] (!%p243_p3)  ;;  %v335_v20 = vld [vmem:[%s1723_s1 + $0x20] sm:$0xff] (!%p243_p3) }
   0xc   : > { %v336_v21 = vld [vmem:[%s1723_s1 + $0x28] sm:$0xff] (!%p243_p3)  ;;  %v337_v22 = vld [vmem:[%s1723_s1 + $0x30] sm:$0xff] (!%p243_p3)  ;;  %v338_v23 = vld [vmem:[%s1723_s1 + $0x38] sm:$0xff] (!%p243_p3) }
   0xd   : > { %382 = vperm.xlu0 (!%p243_p3), %1235, %v348_v5   ;;  %392 = vperm.xlu1 (!%p243_p3), %1236, %v350_v7   ;;  %v339_v24 = vld [vmem:[%s1723_s1 + $0x40] sm:$0xff] (!%p243_p3)  ;;  %v340_v25 = vld [vmem:[%s1723_s1 + $0x48] sm:$0xff] (!%p243_p3)  ;;  %v341_v26 = vld [vmem:[%s1723_s1 + $0x50] sm:$0xff] (!%p243_p3) }
   0xe   : > { %s1734_s21 = smov (!%p296_p4, %s1252_s21), 1  ;;  %v342_v27 = vld [vmem:[%s1723_s1 + $0x58] sm:$0xff] }
   0xf   : > { %s1189_s25 = sshll.u32 %s1734_s21, 3  ;;  %s1191_s30 = sshll.u32 %s1734_s21, 6 }
  0x10   : > { %s303_s8 = scalar_lea.vmem %s1722_s0, %s1189_s25  ;;  %s1677_s9 = scalar_lea.vmem %s1728_s6, %s1191_s30 }
  0x11   : > { %v330_v4 = vld [vmem:[%s303_s8] sm:$0x77]  ;;  %397 = vperm.xlu0 %1235, %v351_v9   ;;  %402 = vperm.xlu1 %1236, %v352_v10   ;;  %s313_s12 = scalar_lea.vmem %s1726_s4, %s1189_s25  ;;  %s320_s15 = scalar_lea.vmem %s1727_s5, %s1734_s21 }
  0x12   : > { %v416_v6 = vcombine.high %v330_v4, %v330_v4 }
  0x14   : > { %1136 = vmatprep.subr.msk.mxu0 %vm454_vm0, %v416_v6 }
  0x15   : > { %1137 = vmatpush1.msk.msra.mxu0 %vm454_vm0, %v330_v4  ;;  %407 = vperm.xlu0 %1235, %v353_v12  }
  0x16   : > { %1138 = vmatmul.mubr.msk.f32.vlgmr.msra.gmra.mrb[0].mxu0 %vm417_vm1, %v331_v8  ;;  %412 = vperm.xlu1 %1236, %v354_v13  }
  0x17   : > { %529 = vmatprep.mubr.f32.mxu0 %v1262_v0 }
  0x19   : > { %357 = vperm.xlu0 %1235, %v343_v15  }
  0x1a   : > { %1139 = vmatmul.mubr.msk.f32.gmra.mrb[2].mxu0 %vm417_vm1, %v332_v11  ;;  %362 = vperm.xlu1 %1236, %v344_v16  }
  0x1b   : > { %535 = vmatprep.mubr.f32.mxu0 %v1262_v0 }
  0x1d   : > { %367 = vperm.xlu0 %1235, %v345_v18  }
  0x1e   : > { %1140 = vmatmul.mubr.msk.f32.gmra.mrb[4].mxu0 %vm417_vm1, %v333_v14  ;;  %372 = vperm.xlu1 %1236, %v346_v19  }
  0x1f   : > { %541 = vmatprep.mubr.f32.mxu0 %v1262_v0 }
  0x22   : > { %1141 = vmatmul.mubr.msk.f32.gmra.mrb[6].mxu0 %vm417_vm1, %v334_v17 }
  0x23   : > { %547 = vmatprep.mubr.f32.mxu0 %v1262_v0 }
  0x26   : > { %1142 = vmatmul.mubr.msk.f32.gmra.mrb[8].mxu0 %vm417_vm1, %v335_v20 }
  0x27   : > { %553 = vmatprep.mubr.f32.mxu0 %v1262_v0 }
  0x2a   : > { %1143 = vmatmul.mubr.msk.f32.gmra.mrb[10].mxu0 %vm417_vm1, %v336_v21 }
  0x2b   : > { %559 = vmatprep.mubr.f32.mxu0 %v1262_v0 }
  0x2e   : > { %1144 = vmatmul.mubr.msk.f32.gmra.mrb[12].mxu0 %vm417_vm1, %v337_v22 }
  0x2f   : > { %565 = vmatprep.mubr.f32.mxu0 %v1262_v0 }
  0x32   : > { %1145 = vmatmul.mubr.msk.f32.gmra.mrb[14].mxu0 %vm417_vm1, %v338_v23 }
  0x33   : > { %571 = vmatprep.mubr.f32.mxu0 %v1262_v0 }
  0x36   : > { %1146 = vmatmul.mubr.msk.f32.gmra.mrb[16].mxu0 %vm417_vm1, %v339_v24 }
  0x37   : > { %577 = vmatprep.mubr.f32.mxu0 %v1262_v0 }
  0x3a   : > { %1147 = vmatmul.mubr.msk.f32.gmra.mrb[18].mxu0 %vm417_vm1, %v340_v25 }
  0x3b   : > { %583 = vmatprep.mubr.f32.mxu0 %v1262_v0 }
  0x3e   : > { %1148 = vmatmul.mubr.msk.f32.gmra.mrb[20].mxu0 %vm417_vm1, %v341_v26 }
  0x3f   : > { %589 = vmatprep.mubr.f32.mxu0 %v1262_v0 }
  0x42   : > { %1149 = vmatmul.mubr.msk.f32.gmra.mrb[22].mxu0 %vm417_vm1, %v342_v27 }
  0x88   : > { %v378_v38 = vpop.permute.xlu0 %377  ;;  %v388_v41 = vpop.permute.xlu1 %387 }
  0x8c   : > { %v383_v46 = vpop.permute.xlu0 %382  ;;  %v393_v50 = vpop.permute.xlu1 %392 }
  0x90   : > { %v398_v59 = vpop.permute.xlu0 %397  ;;  %v403_v3 = vpop.permute.xlu1 %402 }
  0x94   : > { %v408_v10 = vpop.permute.xlu0 %407 }
  0x95   : > { %v413_v17 = vpop.permute.xlu1 %412 }
  0xe9   : > { %v1423_v28 = vpop.f32.mrb[0].mxu0 }
  0xea   : > { %v1425_v29 = vpop.f32.mrb[1].mxu0 }
  0xed   : > { %v1427_v30 = vpop.f32.mrb[2].mxu0 }
  0xee   : > { %v1429_v31 = vpop.f32.mrb[3].mxu0 }
  0xf1   : > { %v1431_v32 = vpop.f32.mrb[4].mxu0 }
  0xf2   : > { %v1433_v33 = vpop.f32.mrb[5].mxu0 }
  0xf5   : > { %v1435_v34 = vpop.f32.mrb[6].mxu0 }
  0xf6   : > { %v1437_v35 = vpop.f32.mrb[7].mxu0 }
  0xf9   : > { %v549_v36 = vpop.f32.mrb[8].mxu0 }
  0xfa   : > { %v551_v37 = vpop.f32.mrb[9].mxu0  ;;  %v1439_v43 = vadd.f32 %v549_v36, %v378_v38  ;;  %v622_v36 = vlaneseq }
  0xfb   : > { %v1443_v47 = vadd.f32 %v551_v37, %v378_v38 }
  0xfd   : > { %v555_v39 = vpop.f32.mrb[10].mxu0 }
  0xfe   : > { %v557_v40 = vpop.f32.mrb[11].mxu0  ;;  %v1451_v53 = vadd.f32 %v555_v39, %v383_v46 }
  0xff   : > { %v1455_v56 = vadd.f32 %v557_v40, %v383_v46 }
 0x101   : > { %v561_v42 = vpop.f32.mrb[12].mxu0 }
 0x102   : > { %v1441_v44 = vadd.f32 %v561_v42, %v388_v41  ;;  %v563_v45 = vpop.f32.mrb[13].mxu0 }
 0x103   : > { %v1445_v48 = vadd.f32 %v563_v45, %v388_v41  ;;  %v1475_v41 = vshrl.u32 %v622_v36, 7 }
 0x104   : > { %v596_v49 = vmin.f32 %v1439_v43, %v1441_v44 }
 0x105   : > { %v609_v51 = vmin.f32 %v1443_v47, %v1445_v48  ;;  %v567_v52 = vpop.f32.mrb[14].mxu0 }
 0x106   : > { %v1453_v54 = vadd.f32 %v567_v52, %v393_v50  ;;  %v569_v55 = vpop.f32.mrb[15].mxu0 }
 0x107   : > { %v1457_v57 = vadd.f32 %v569_v55, %v393_v50  ;;  %v1478_v50 = vadd.s32 8, %v1475_v41  ;;  %v1481_v55 = vadd.s32 16, %v1475_v41 }
 0x108   : > { %v597_v58 = vmin.f32 %v1451_v53, %v1453_v54 }
 0x109   : > { %v610_v60 = vmin.f32 %v1455_v56, %v1457_v57  ;;  %v573_v61 = vpop.f32.mrb[16].mxu0 }
 0x10a   : > { %v574_v62 = vadd.f32 %v573_v61, %v398_v59  ;;  %v575_v63 = vpop.f32.mrb[17].mxu0  ;;  %v1493_v61 = vadd.s32 48, %v1475_v41 }
 0x10b   : > { %v1463_v1 = vadd.f32 %v575_v63, %v398_v59  ;;  %v1487_v59 = vadd.s32 32, %v1475_v41  ;;  %v1496_v63 = vadd.s32 56, %v1475_v41 }
 0x10c   : > { %v598_v2 = vmin.f32 %v596_v49, %v574_v62 }
 0x10d   : > { %v611_v4 = vmin.f32 %v609_v51, %v1463_v1  ;;  %v579_v5 = vpop.f32.mrb[18].mxu0 }
 0x10e   : > { %v580_v6 = vadd.f32 %v579_v5, %v403_v3  ;;  %v581_v7 = vpop.f32.mrb[19].mxu0 }
 0x10f   : > { %v1466_v8 = vadd.f32 %v581_v7, %v403_v3 }
 0x110   : > { %v599_v9 = vmin.f32 %v597_v58, %v580_v6  ;;  %v1484_v58 = vadd.s32 24, %v1475_v41 }
 0x111   : > { %v612_v11 = vmin.f32 %v610_v60, %v1466_v8  ;;  %v585_v12 = vpop.f32.mrb[20].mxu0  ;;  %v1490_v60 = vadd.s32 40, %v1475_v41 }
 0x112   : > { %v586_v13 = vadd.f32 %v585_v12, %v408_v10  ;;  %v587_v14 = vpop.f32.mrb[21].mxu0 }
 0x113   : > { %v1469_v15 = vadd.f32 %v587_v14, %v408_v10 }
 0x114   : > { %v600_v16 = vmin.f32 %v598_v2, %v586_v13 }
 0x115   : > { %v613_v18 = vmin.f32 %v611_v4, %v1469_v15  ;;  %v591_v19 = vpop.f32.mrb[22].mxu0 }
 0x116   : > { %v592_v20 = vadd.f32 %v591_v19, %v413_v17  ;;  %v593_v21 = vpop.f32.mrb[23].mxu0 }
 0x117   : > { %v1472_v22 = vadd.f32 %v593_v21, %v413_v17 }
 0x118   : > { %v601_v23 = vmin.f32 %v599_v9, %v592_v20 }
 0x119   : > { %v614_v24 = vmin.f32 %v612_v11, %v1472_v22 }
 0x11a   : > { %v602_v25 = vmin.f32 %v600_v16, %v601_v23 }
 0x11b   : > { %v615_v26 = vmin.f32 %v613_v18, %v614_v24 }
 0x11c   : > { %v603_v27 = vrot.slane %v602_v25, 4 }
 0x11d   : > { %v616_v37 = vrot.slane %v615_v26, 4 }
 0x11e   : > { %v604_v38 = vmin.f32 %v602_v25, %v603_v27 }
 0x11f   : > { %v617_v39 = vmin.f32 %v615_v26, %v616_v37 }
 0x120   : > { %v605_v40 = vrot.slane %v604_v38, 2 }
 0x121   : > { %v618_v42 = vrot.slane %v617_v39, 2 }
 0x122   : > { %v606_v45 = vmin.f32 %v604_v38, %v605_v40 }
 0x123   : > { %v619_v46 = vmin.f32 %v617_v39, %v618_v42 }
 0x124   : > { %v607_v49 = vrot.slane %v606_v45, 1 }
 0x125   : > { %v620_v51 = vrot.slane %v619_v46, 1 }
 0x126   : > { %v608_v52 = vmin.f32 %v606_v45, %v607_v49 }
 0x127   : > { %v621_v2 = vmin.f32 %v619_v46, %v620_v51 }
 0x128   : > { %vm631_vm2 = vcmp.le.f32.partialorder %v1439_v43, %v608_v52  ;;  %vm633_vm3 = vcmp.le.f32.partialorder %v1451_v53, %v608_v52  ;;  %vm635_vm4 = vcmp.le.f32.partialorder %v1441_v44, %v608_v52  ;;  %vm637_vm5 = vcmp.le.f32.partialorder %v1453_v54, %v608_v52 }
 0x129   : > { %vm639_vm6 = vcmp.le.f32.partialorder %v574_v62, %v608_v52  ;;  %vm641_vm7 = vcmp.le.f32.partialorder %v580_v6, %v608_v52  ;;  %vm643_vm8 = vcmp.le.f32.partialorder %v586_v13, %v608_v52  ;;  %vm645_vm9 = vcmp.le.f32.partialorder %v592_v20, %v608_v52 }
 0x12a   : > { %v647_v3 = vsel %vm631_vm2, %v1475_v41, 64  ;;  %v649_v4 = vsel %vm633_vm3, %v1478_v50, 64  ;;  %v651_v5 = vsel %vm635_vm4, %v1481_v55, 64  ;;  %v653_v7 = vsel %vm637_vm5, %v1484_v58, 64 }
 0x12b   : > { %v655_v43 = vsel %vm639_vm6, %v1487_v59, 64  ;;  %v657_v53 = vsel %vm641_vm7, %v1490_v60, 64  ;;  %v659_v44 = vsel %vm643_vm8, %v1493_v61, 64  ;;  %v661_v54 = vsel %vm645_vm9, %v1496_v63, 64 }
 0x12c   : > { %vm663_vm10 = vcmp.lt.s32.totalorder %v647_v3, %v651_v5  ;;  %vm665_vm11 = vcmp.lt.s32.totalorder %v649_v4, %v653_v7  ;;  %vm632_vm12 = vcmp.le.f32.partialorder %v1443_v47, %v621_v2  ;;  %vm634_vm13 = vcmp.le.f32.partialorder %v1455_v56, %v621_v2 }
 0x12d   : > { %v664_v62 = vsel %vm663_vm10, %v647_v3, %v651_v5  ;;  %v666_v6 = vsel %vm665_vm11, %v649_v4, %v653_v7  ;;  %vm636_vm14 = vcmp.le.f32.partialorder %v1445_v48, %v621_v2  ;;  %vm638_vm15 = vcmp.le.f32.partialorder %v1457_v57, %v621_v2 }
 0x12e   : > { %vm667_vm0 = vcmp.lt.s32.totalorder %v664_v62, %v655_v43  ;;  %vm669_vm1 = vcmp.lt.s32.totalorder %v666_v6, %v657_v53  ;;  %vm640_vm2 = vcmp.le.f32.partialorder %v1463_v1, %v621_v2  ;;  %vm642_vm3 = vcmp.le.f32.partialorder %v1466_v8, %v621_v2 }
 0x12f   : > { %v668_v9 = vsel %vm667_vm0, %v664_v62, %v655_v43  ;;  %v670_v10 = vsel %vm669_vm1, %v666_v6, %v657_v53  ;;  %vm644_vm4 = vcmp.le.f32.partialorder %v1469_v15, %v621_v2  ;;  %vm646_vm5 = vcmp.le.f32.partialorder %v1472_v22, %v621_v2 }
 0x130   : > { %vm671_vm6 = vcmp.lt.s32.totalorder %v668_v9, %v659_v44  ;;  %vm673_vm7 = vcmp.lt.s32.totalorder %v670_v10, %v661_v54  ;;  %v648_v11 = vsel %vm632_vm12, %v1475_v41, 64  ;;  %v650_v12 = vsel %vm634_vm13, %v1478_v50, 64 }
 0x131   : > { %v672_v13 = vsel %vm671_vm6, %v668_v9, %v659_v44  ;;  %v674_v14 = vsel %vm673_vm7, %v670_v10, %v661_v54  ;;  %v652_v16 = vsel %vm636_vm14, %v1481_v55, 64  ;;  %v654_v17 = vsel %vm638_vm15, %v1484_v58, 64 }
 0x132   : > { %vm675_vm8 = vcmp.lt.s32.totalorder %v672_v13, %v674_v14  ;;  %v656_v47 = vsel %vm640_vm2, %v1487_v59, 64  ;;  %vm686_vm9 = vcmp.lt.s32.totalorder %v648_v11, %v652_v16  ;;  %vm688_vm10 = vcmp.lt.s32.totalorder %v650_v12, %v654_v17 }
 0x133   : > { %v676_v18 = vsel %vm675_vm8, %v672_v13, %v674_v14  ;;  %v658_v19 = vsel %vm642_vm3, %v1490_v60, 64  ;;  %v687_v20 = vsel %vm686_vm9, %v648_v11, %v652_v16  ;;  %v689_v48 = vsel %vm688_vm10, %v650_v12, %v654_v17 }
 0x134   : > { %v677_v56 = vrot.slane %v676_v18, 4  ;;  %v660_v57 = vsel %vm644_vm4, %v1493_v61, 64  ;;  %vm690_vm11 = vcmp.lt.s32.totalorder %v687_v20, %v656_v47  ;;  %vm692_vm12 = vcmp.lt.s32.totalorder %v689_v48, %v658_v19 }
 0x135   : > { %v662_v1 = vsel %vm646_vm5, %v1496_v63, 64  ;;  %v691_v21 = vsel %vm690_vm11, %v687_v20, %v656_v47  ;;  %v693_v23 = vsel %vm692_vm12, %v689_v48, %v658_v19  ;;  %v1264_v44 = vmov 1.0|1.0  }
 0x136   : > { %vm678_vm13 = vcmp.lt.s32.totalorder %v676_v18, %v677_v56  ;;  %vm694_vm14 = vcmp.lt.s32.totalorder %v691_v21, %v660_v57  ;;  %vm696_vm15 = vcmp.lt.s32.totalorder %v693_v23, %v662_v1 }
 0x137   : > { %v679_v24 = vsel %vm678_vm13, %v676_v18, %v677_v56  ;;  %v695_v25 = vsel %vm694_vm14, %v691_v21, %v660_v57  ;;  %v697_v26 = vsel %vm696_vm15, %v693_v23, %v662_v1  ;;  %v363_v18 = vpop.permute.xlu1 %362 }
 0x138   : > { %v680_v8 = vrot.slane %v679_v24, 2  ;;  %vm698_vm0 = vcmp.lt.s32.totalorder %v695_v25, %v697_v26 }
 0x139   : > { %v699_v27 = vsel %vm698_vm0, %v695_v25, %v697_v26 }
 0x13a   : > { %vm681_vm1 = vcmp.lt.s32.totalorder %v679_v24, %v680_v8  ;;  %v700_v36 = vrot.slane %v699_v27, 4 }
 0x13b   : > { %v682_v15 = vsel %vm681_vm1, %v679_v24, %v680_v8  ;;  %v373_v56 = vpop.permute.xlu1 %372 }
 0x13c   : > { %v683_v37 = vrot.slane %v682_v15, 1  ;;  %vm701_vm2 = vcmp.lt.s32.totalorder %v699_v27, %v700_v36 }
 0x13d   : > { %v702_v38 = vsel %vm701_vm2, %v699_v27, %v700_v36  ;;  %v534_v36 = vadd.f32 %v1429_v31, %v363_v18  ;;  %v544_v31 = vadd.f32 %v1435_v34, %v373_v56 }
 0x13e   : > { %vm684_vm3 = vcmp.lt.s32.totalorder %v682_v15, %v683_v37  ;;  %v703_v22 = vrot.slane %v702_v38, 2 }
 0x13f   : > { %v1542_v39 = vsel %vm684_vm3, %v682_v15, %v683_v37  ;;  %v532_v15 = vadd.f32 %v1427_v30, %v363_v18 }
 0x140   : > { %vm704_vm4 = vcmp.lt.s32.totalorder %v702_v38, %v703_v22  ;;  %vm709_vm5 = vcmp.eq.s32.totalorder %v1475_v41, %v1542_v39  ;;  %vm711_vm6 = vcmp.eq.s32.totalorder %v1478_v50, %v1542_v39  ;;  %vm713_vm7 = vcmp.eq.s32.totalorder %v1481_v55, %v1542_v39 }
 0x141   : > { %v705_v40 = vsel %vm704_vm4, %v702_v38, %v703_v22  ;;  %vm715_vm8 = vcmp.eq.s32.totalorder %v1484_v58, %v1542_v39  ;;  %vm717_vm9 = vcmp.eq.s32.totalorder %v1487_v59, %v1542_v39  ;;  %vm719_vm10 = vcmp.eq.s32.totalorder %v1490_v60, %v1542_v39  ;;  %vm1194_vm4 = vmpackc.low %vm711_vm6, %vm709_vm5 }
 0x142   : > { %v706_v42 = vrot.slane %v705_v40, 1  ;;  %vm721_vm11 = vcmp.eq.s32.totalorder %v1493_v61, %v1542_v39  ;;  %v1152_v45 = vsel %vm711_vm6, 1.0, %v1262_v0  ;;  %v1150_v46 = vsel %vm709_vm5, 1.0, %v1262_v0  ;;  %vm1198_vm5 = vmpackc.low %vm715_vm8, %vm713_vm7 }
 0x143   : > { %vm723_vm12 = vcmp.eq.s32.totalorder %v1496_v63, %v1542_v39  ;;  %v1154_v49 = vsel %vm713_vm7, 1.0, %v1262_v0  ;;  %v1156_v51 = vsel %vm715_vm8, 1.0, %v1262_v0  ;;  %v1158_v52 = vsel %vm717_vm9, 1.0, %v1262_v0 }
 0x144   : > { %vm707_vm13 = vcmp.lt.s32.totalorder %v705_v40, %v706_v42  ;;  %v1160_v3 = vsel %vm719_vm10, 1.0, %v1262_v0  ;;  %v1164_v4 = vsel %vm723_vm12, 1.0, %v1262_v0  ;;  %v1162_v5 = vsel %vm721_vm11, 1.0, %v1262_v0  ;;  %vm1206_vm8 = vmpackc.low %vm723_vm12, %vm721_vm11 }
 0x145   : > { %v708_v2 = vsel %vm707_vm13, %v705_v40, %v706_v42  ;;  %vm915_vm11 = vcmask 0  }
 0x146   : > { %vm710_vm14 = vcmp.eq.s32.totalorder %v1475_v41, %v708_v2  ;;  %vm712_vm15 = vcmp.eq.s32.totalorder %v1478_v50, %v708_v2  ;;  %vm714_vm0 = vcmp.eq.s32.totalorder %v1481_v55, %v708_v2  ;;  %vm716_vm1 = vcmp.eq.s32.totalorder %v1484_v58, %v708_v2  ;;  %v757_v55 = vld [vmem:[%s1725_s3] sm:$0xff]  ;;  %v758_v58 = vld [vmem:[%s1725_s3 + $0x8] sm:$0xff] }
 0x147   : > { %vm1192_vm2 = vmpackc.low %vm712_vm15, %vm710_vm14  ;;  %v1153_v7 = vsel %vm712_vm15, 1.0, %v1262_v0  ;;  %v1151_v43 = vsel %vm710_vm14, 1.0, %v1262_v0  ;;  %v1155_v53 = vsel %vm714_vm0, 1.0, %v1262_v0  ;;  %vm718_vm3 = vcmp.eq.s32.totalorder %v1487_v59, %v708_v2  ;;  %v759_v59 = vld [vmem:[%s1725_s3 + $0x10] sm:$0xff] }
 0x148   : > { %1193 = vmatprep.subr.msk.bf16.mxu1 %vm1192_vm2, %v1264_v44  ;;  %v920_v54 = vadd.f32 %v1153_v7, %v1152_v45  ;;  %v917_v62 = vadd.f32 %v1151_v43, %v1150_v46  ;;  %v923_v6 = vadd.f32 %v1155_v53, %v1154_v49  ;;  %vm720_vm13 = vcmp.eq.s32.totalorder %v1490_v60, %v708_v2  ;;  %vm1196_vm14 = vmpackc.low %vm716_vm1, %vm714_vm0  ;;  %v760_v60 = vld [vmem:[%s1725_s3 + $0x18] sm:$0xff] }
 0x149   : > { %1195 = vmatpush1.bf16.msk.msra.mxu1 %vm1194_vm4, %v1264_v44  ;;  %v1157_v9 = vsel %vm716_vm1, 1.0, %v1262_v0  ;;  %v1159_v10 = vsel %vm718_vm3, 1.0, %v1262_v0  ;;  %vm722_vm15 = vcmp.eq.s32.totalorder %v1493_v61, %v708_v2  ;;  %vm724_vm2 = vcmp.eq.s32.totalorder %v1496_v63, %v708_v2  ;;  %vm1200_vm6 = vmpackc.low %vm720_vm13, %vm718_vm3  ;;  %v761_v61 = vld [vmem:[%s1725_s3 + $0x20] sm:$0x7]  ;;  %v358_v63 = vpop.permute.xlu0 %357 }
 0x14a   : > { %921 = vadd.xlane.f32.xlu0 %v920_v54  ;;  %1197 = vmatprep.subr.msk.bf16.mxu1 %vm1196_vm14, %v1264_v44  ;;  %v926_v41 = vadd.f32 %v1157_v9, %v1156_v51  ;;  %v929_v50 = vadd.f32 %v1159_v10, %v1158_v52  ;;  %v1161_v11 = vsel %vm720_vm13, 1.0, %v1262_v0  ;;  %v1165_v12 = vsel %vm724_vm2, 1.0, %v1262_v0  ;;  %vm1202_vm0 = vmpackc.low %vm719_vm10, %vm717_vm9 }
 0x14b   : > { %918 = vadd.xlane.f32.xlu1 %v917_v62  ;;  %v932_v13 = vadd.f32 %v1161_v11, %v1160_v3  ;;  %v938_v14 = vadd.f32 %v1165_v12, %v1164_v4  ;;  %v1163_v16 = vsel %vm722_vm15, 1.0, %v1262_v0  ;;  %vm1204_vm7 = vmpackc.low %vm724_vm2, %vm722_vm15  ;;  %vm762_vm9 = vcmask 523264  }
 0x14c   : > { %v1632_v17 = vadd.f32 %v1163_v16, %v1162_v5  ;;  %vm941_vm10 = vcmask 7168   ;;  %v526_v23 = vadd.f32 %v1423_v28, %v358_v63  ;;  %v528_v24 = vadd.f32 %v1425_v29, %v358_v63 }
 0x14d   : > { %1199 = vmatpush1.bf16.msk.msra.mxu1 %vm1198_vm5, %v1264_v44  ;;  %v368_v47 = vpop.permute.xlu0 %367  ;;  %v546_v5 = vadd.f32 %v1437_v35, %v373_v56 }
 0x14e   : > { %924 = vadd.xlane.f32.xlu0 %v923_v6  ;;  %1201 = vmatprep.subr.msk.bf16.mxu1 %vm1200_vm6, %v1264_v44  ;;  %v538_v40 = vadd.f32 %v1431_v32, %v368_v47  ;;  %v540_v28 = vadd.f32 %v1433_v33, %v368_v47 }
 0x14f   : > { %927 = vadd.xlane.f32.xlu1 %v926_v41 }
 0x151   : > { %1203 = vmatpush1.bf16.msk.msra.mxu1 %vm1202_vm0, %v1264_v44 }
 0x152   : > { %930 = vadd.xlane.f32.xlu0 %v929_v50  ;;  %1205 = vmatprep.subr.msk.bf16.mxu1 %vm1204_vm7, %v1264_v44 }
 0x153   : > { %933 = vadd.xlane.f32.xlu1 %v932_v13 }
 0x155   : > { %1207 = vmatpush1.bf16.msk.msra.mxu1 %vm1206_vm8, %v1264_v44 }
 0x157   : > { %939 = vadd.xlane.f32.xlu1 %v938_v14 }
 0x158   : > { %1182 = vmatmul.mubr.msk.f32.vlgmr.msra.gmra.mrb[0].mxu1 %vm762_vm9, %v757_v55 }
 0x159   : > { %848 = vmatprep.mubr.f32.mxu1 %v1262_v0 }
 0x15c   : > { %1183 = vmatmul.mubr.msk.f32.gmra.mrb[2].mxu1 %vm762_vm9, %v758_v58 }
 0x15d   : > { %854 = vmatprep.mubr.f32.mxu1 %v1262_v0 }
 0x160   : > { %1184 = vmatmul.mubr.msk.f32.gmra.mrb[4].mxu1 %vm762_vm9, %v759_v59 }
 0x161   : > { %860 = vmatprep.mubr.f32.mxu1 %v1262_v0 }
 0x164   : > { %1185 = vmatmul.mubr.msk.f32.gmra.mrb[6].mxu1 %vm762_vm9, %v760_v60 }
 0x165   : > { %866 = vmatprep.mubr.f32.mxu1 %v1262_v0 }
 0x168   : > { %1186 = vmatmul.mubr.msk.f32.gmra.mrb[8].mxu1 %vm762_vm9, %v761_v61 }
 0x1d7   : > { %v922_v0 = vpop.xlane.xlu0 %921 }
 0x1d8   : > { %943 = vst.msk [vmem:[%s1677_s9 + $0x8] sm:$0xff] %vm941_vm10, %v922_v0  ;;  %v919_v19 = vpop.xlane.xlu1 %918 }
 0x1d9   : > { %942 = vst.msk [vmem:[%s1677_s9] sm:$0xff] %vm941_vm10, %v919_v19 }
 0x1db   : > { %v925_v20 = vpop.xlane.xlu0 %924 }
 0x1dc   : > { %944 = vst.msk [vmem:[%s1677_s9 + $0x10] sm:$0xff] %vm941_vm10, %v925_v20  ;;  %v928_v48 = vpop.xlane.xlu1 %927 }
 0x1dd   : > { %945 = vst.msk [vmem:[%s1677_s9 + $0x18] sm:$0xff] %vm941_vm10, %v928_v48 }
 0x1df   : > { %v931_v57 = vpop.xlane.xlu0 %930 }
 0x1e0   : > { %946 = vst.msk [vmem:[%s1677_s9 + $0x20] sm:$0xff] %vm941_vm10, %v931_v57  ;;  %v934_v1 = vpop.xlane.xlu1 %933 }
 0x1e1   : > { %947 = vst.msk [vmem:[%s1677_s9 + $0x28] sm:$0xff] %vm941_vm10, %v934_v1 }
 0x1e4   : > { %v940_v21 = vpop.xlane.xlu1 %939 }
 0x1e5   : > { %949 = vst.msk [vmem:[%s1677_s9 + $0x38] sm:$0xff] %vm941_vm10, %v940_v21 }
 0x22b   : > { %v844_v8 = vpop.f32.mrb[0].mxu1 }
 0x22c   : > { %v878_v25 = vsub.f32 %v844_v8, %v526_v23  ;;  %v846_v26 = vpop.f32.mrb[1].mxu1 }
 0x22d   : > { %v879_v27 = vsub.f32 %v846_v26, %v528_v24 }
 0x22e   : > { %v886_v42 = vmul.f32 %v878_v25, %v878_v25 }
 0x22f   : > { %v850_v37 = vpop.f32.mrb[2].mxu1  ;;  %v887_v46 = vmul.f32 %v879_v27, %v879_v27 }
 0x230   : > { %v880_v38 = vsub.f32 %v850_v37, %v532_v15  ;;  %v852_v39 = vpop.f32.mrb[3].mxu1 }
 0x231   : > { %v881_v22 = vsub.f32 %v852_v39, %v534_v36 }
 0x232   : > { %v888_v45 = vmul.f32 %v880_v38, %v880_v38 }
 0x233   : > { %v889_v29 = vmul.f32 %v881_v22, %v881_v22  ;;  %v856_v49 = vpop.f32.mrb[4].mxu1 }
 0x234   : > { %v894_v51 = vadd.f32 %v888_v45, %v886_v42  ;;  %v882_v52 = vsub.f32 %v856_v49, %v538_v40  ;;  %v858_v2 = vpop.f32.mrb[5].mxu1 }
 0x235   : > { %v903_v3 = vadd.f32 %v889_v29, %v887_v46  ;;  %v883_v30 = vsub.f32 %v858_v2, %v540_v28 }
 0x236   : > { %v890_v4 = vmul.f32 %v882_v52, %v882_v52 }
 0x237   : > { %v891_v7 = vmul.f32 %v883_v30, %v883_v30  ;;  %v862_v43 = vpop.f32.mrb[6].mxu1 }
 0x238   : > { %v895_v32 = vadd.f32 %v894_v51, %v890_v4  ;;  %v884_v53 = vsub.f32 %v862_v43, %v544_v31  ;;  %v864_v44 = vpop.f32.mrb[7].mxu1 }
 0x239   : > { %v904_v54 = vadd.f32 %v903_v3, %v891_v7  ;;  %v885_v33 = vsub.f32 %v864_v44, %v546_v5 }
 0x23a   : > { %v892_v62 = vmul.f32 %v884_v53, %v884_v53 }
 0x23b   : > { %v893_v6 = vmul.f32 %v885_v33, %v885_v33  ;;  %v868_v9 = vpop.f32.mrb[8].mxu1 }
 0x23c   : > { %v896_v10 = vadd.f32 %v895_v32, %v892_v62  ;;  %v870_v63 = vpop.f32.mrb[9].mxu1 }
 0x23d   : > { %v905_v41 = vadd.f32 %v904_v54, %v893_v6  ;;  %v875_v18 = vcombine.low %v868_v9, %v870_v63 }
 0x23e   : > { %v897_v50 = vrot.slane %v896_v10, 4 }
 0x23f   : > { %v906_v11 = vrot.slane %v905_v41, 4  ;;  %877 = vst [vmem:[%s313_s12] sm:$0x77] %v875_v18 }
 0x240   : > { %v898_v12 = vadd.f32 %v897_v50, %v896_v10 }
 0x241   : > { %v907_v34 = vadd.f32 %v906_v11, %v905_v41 }
 0x242   : > { %v899_v13 = vrot.slane %v898_v12, 2 }
 0x243   : > { %v908_v35 = vrot.slane %v907_v34, 2 }
 0x244   : > { %v900_v14 = vadd.f32 %v899_v13, %v898_v12 }
 0x245   : > { %v909_v16 = vadd.f32 %v908_v35, %v907_v34 }
 0x246   : > { %v901_v55 = vrot.slane %v900_v14, 1 }
 0x247   : > { %v910_v58 = vrot.slane %v909_v16, 1 }
 0x248   : > { %v902_v59 = vadd.f32 %v901_v55, %v900_v14 }
 0x249   : > { %v911_v60 = vadd.f32 %v910_v58, %v909_v16 }
 0x24b   : > { %v912_v61 = vadd.f32 %v911_v60, %v902_v59 }
 0x24d   : > { %913 = vadd.xlane.f32.xlu0 %v912_v61 }
 0x251   : > { %936 = vadd.xlane.f32.xlu0 %v1632_v17 }
 0x2da   : > { %v914_v47 = vpop.xlane.xlu0 %913 }
 0x2db   : > { %916 = vst.msk [vmem:[%s320_s15] sm:$0x1] %vm915_vm11, %v914_v47 }
 0x2de   : > { %v937_v56 = vpop.xlane.xlu0 %936 }
 0x2df   : > { %948 = vst.msk [vmem:[%s1677_s9 + $0x30] sm:$0xff] %vm941_vm10, %v937_v56 }
 0x2e0 PF: > { %s17_s23 = sadd.s32 1, %s1260_s23   ;;  %s1729_s21 = smov %s1256_s22 }
 0x2e1   : > { %p14_p5 = scmp.ge.s32.totalorder %s17_s23, 4   ;;  %s1730_s22 = smov %s1732_s24 }
 0x2e3   :  { %16 = sbr.rel (!%p14_p5) target bundleno = 2 (0x2), region = 90 }

</bundles_post_ra>
